<compile_context>
chip_gen: v5e
topology: v5e:2x2
jax: 0.10.0
libtpu: 0.0.40
codegen_flags: <defaults>
</compile_context>

<pallas_src>
import numpy as np
import jax
import jax.numpy as jnp
from jax.experimental import pallas as pl
from jax.experimental.pallas import tpu as pltpu

LANE = 128
SUBLANE = 8


def _round_up(x, m):
    return ((x + m - 1) // m) * m


def _pad2d(a, rows, cols):
    r, c = a.shape
    return jnp.pad(a, ((0, rows - r), (0, cols - c)))


# ---------------------------------------------------------------------------
# Kernel: one batch tile per grid step; weights/biases resident across steps.
# ---------------------------------------------------------------------------
def dqn_kernel(x_ref, w1_ref, b1_ref, w2_ref, b2_ref, w3_ref, b3_ref, out_ref):
    x = x_ref[...]  # [TB, D_in] f32 -- raw state tile, true feature width

    # Layer 1 in f32: K = D_in is tiny so MXU rate is irrelevant, and this
    # avoids any cast/pad of the activation stream outside the kernel.
    h1 = jnp.dot(x, w1_ref[...], preferred_element_type=jnp.float32) + b1_ref[...]
    h1 = jnp.maximum(h1, 0.0).astype(w2_ref.dtype)  # -> bf16 for MXU layers 2/3

    h2 = jnp.dot(h1, w2_ref[...], preferred_element_type=jnp.float32) + b2_ref[...]
    h2 = jnp.maximum(h2, 0.0).astype(w3_ref.dtype)

    out = jnp.dot(h2, w3_ref[...], preferred_element_type=jnp.float32) + b3_ref[...]
    out_ref[...] = out.astype(out_ref.dtype)  # lane-dense [TB, 128] store
    # TODO(synk): optionally fuse a per-row argmax here (int32 action ids) to
    # shrink the output stream ~128x for pure acting-time inference.


# ---------------------------------------------------------------------------
# Parameter setup (plain JAX, done once).
# ---------------------------------------------------------------------------
def init_params(key, input_dim, fc1_dims, fc2_dims, n_actions):
    """nn.Linear-style init: U(-1/sqrt(fan_in), +1/sqrt(fan_in)), W stored [in, out]."""
    keys = jax.random.split(key, 6)

    def linear(kw, kb, fan_in, fan_out):
        bound = 1.0 / jnp.sqrt(jnp.float32(fan_in))
        w = jax.random.uniform(kw, (fan_in, fan_out), jnp.float32, -bound, bound)
        b = jax.random.uniform(kb, (1, fan_out), jnp.float32, -bound, bound)
        return w, b

    w1, b1 = linear(keys[0], keys[1], input_dim, fc1_dims)
    w2, b2 = linear(keys[2], keys[3], fc1_dims, fc2_dims)
    w3, b3 = linear(keys[4], keys[5], fc2_dims, n_actions)
    return {"w1": w1, "b1": b1, "w2": w2, "b2": b2, "w3": w3, "b3": b3}


def prepare_params(params, compute_dtype=jnp.bfloat16):
    """Pad hidden/output feature dims to 128 lanes; cast layer-2/3 weights to the
    MXU dtype. W1 keeps its true D_in rows (the state streams in unpadded).
    Biases stay f32 (bias-add / ReLU done in f32). Done once at setup time.
    """
    d_in, f1 = params["w1"].shape
    _, f2 = params["w2"].shape
    _, n_act = params["w3"].shape

    f1p = _round_up(f1, LANE)
    f2p = _round_up(f2, LANE)
    nap = _round_up(n_act, LANE)

    # TODO(synk): on v7x, W2/W3 could be stored fp8(e4m3)+scale if fc dims ever
    # grow enough to make this MXU-bound; irrelevant at these sizes.
    prepared = {
        "w1": _pad2d(params["w1"], d_in, f1p).astype(jnp.float32),  # true K rows
        "b1": _pad2d(params["b1"], 1, f1p).astype(jnp.float32),
        "w2": _pad2d(params["w2"], f1p, f2p).astype(compute_dtype),
        "b2": _pad2d(params["b2"], 1, f2p).astype(jnp.float32),
        "w3": _pad2d(params["w3"], f2p, nap).astype(compute_dtype),
        "b3": _pad2d(params["b3"], 1, nap).astype(jnp.float32),
    }
    meta = dict(d_in=d_in, f1=f1, f2=f2, n_actions=n_act,
                f1_p=f1p, f2_p=f2p, n_act_p=nap, compute_dtype=compute_dtype)
    return prepared, meta


# ---------------------------------------------------------------------------
# Forward wrapper.
# ---------------------------------------------------------------------------
def dqn_forward(state, prepared, meta, *, block_b_max=2048,
                out_dtype=jnp.float32, slice_output=True):
    """state: [B, D_in] float32 -> [B, n_actions] (out_dtype, f32 default).

    block_b_max: upper bound on the batch tile. 2048 (or 4096) amortizes the
    ~0.35 us per-grid-step overhead on every generation; per-tile VMEM stays in
    the low-MiB range so the same value works on v5e/v6e/v7x.
    slice_output=False returns the padded lane-dense [Bp, 128] tensor so
    downstream consumers (argmax / TD loss) can defer the un-pad slice.
    """
    B, d_in = state.shape
    assert d_in == meta["d_in"]
    nap = meta["n_act_p"]

    # Tile sizing: enough tiles to keep each <= block_b_max, at least 2 tiles
    # when the batch allows (so v7x's two TensorCores both get work), and a
    # tile sized to the batch (rounded to 8 sublanes) to minimize over-padding.
    num_tiles = max(1, -(-B // block_b_max))
    if B >= 2 * SUBLANE:
        num_tiles = max(num_tiles, 2)
    block_b = _round_up(-(-B // num_tiles), SUBLANE)
    Bp = num_tiles * block_b

    # Only the batch dim is padded (to the tile multiple); the feature dim keeps
    # its true width and the f32 state streams in directly.
    x = state if Bp == B else jnp.pad(state, ((0, Bp - B), (0, 0)))

    p = prepared
    args = (x, p["w1"], p["b1"], p["w2"], p["b2"], p["w3"], p["b3"])

    # Weights & biases keep block (0, 0) across the grid -> resident in VMEM.
    # (They total well under 1 MiB here, so the default double-buffering of
    # constant-index blocks costs negligible VMEM; no need for pl.Buffered(1).)
    resident = lambda arr: pl.BlockSpec(arr.shape, lambda i: (0,) * arr.ndim)
    in_specs = [
        pl.BlockSpec((block_b, d_in), lambda i: (i, 0)),
        resident(p["w1"]), resident(p["b1"]),
        resident(p["w2"]), resident(p["b2"]),
        resident(p["w3"]), resident(p["b3"]),
    ]
    out_spec = pl.BlockSpec((block_b, nap), lambda i: (i, 0))

    # Realistic scheduler hint: FLOPs from true feature dims, weights counted
    # once (resident), x/out counted at their actually-streamed sizes.
    out_itemsize = np.dtype(out_dtype).itemsize
    flops = 2 * Bp * (meta["d_in"] * meta["f1"]
                      + meta["f1"] * meta["f2"]
                      + meta["f2"] * meta["n_actions"])
    param_bytes = sum(int(p[k].size) * p[k].dtype.itemsize
                      for k in ("w1", "b1", "w2", "b2", "w3", "b3"))
    bytes_accessed = int(Bp * d_in * 4 + param_bytes + Bp * nap * out_itemsize)
    cost = pl.CostEstimate(flops=int(flops), transcendentals=0,
                           bytes_accessed=bytes_accessed)

    out_padded = pl.pallas_call(
        dqn_kernel,
        out_shape=jax.ShapeDtypeStruct((Bp, nap), out_dtype),
        grid=(num_tiles,),
        in_specs=in_specs,
        out_specs=out_spec,
        compiler_params=pltpu.CompilerParams(
            # Batch axis is embarrassingly parallel -> v7x megacore sharding.
            dimension_semantics=("parallel",),
            # Pin the scoped VMEM limit explicitly (raises v5e's 16 MiB default;
            # per-tile usage here is only a few MiB even at block_b_max=4096).
            vmem_limit_bytes=32 * 1024 * 1024,
        ),
        cost_estimate=cost,
    )(*args)

    if not slice_output:
        return out_padded  # lane-dense [Bp, 128]; slice once at the consumer end
    return out_padded[:B, :meta["n_actions"]]


# ---------------------------------------------------------------------------
# References for correctness checking.
# ---------------------------------------------------------------------------
def reference_forward_mixed(state, p):
    """Same precision policy as the kernel: layer 1 f32, layers 2/3 bf16 operands
    with f32 accumulation, bf16 inter-layer activations, f32 bias/ReLU."""
    h1 = jnp.maximum(state @ p["w1"] + p["b1"], 0.0).astype(jnp.bfloat16)
    h2 = jnp.dot(h1, p["w2"].astype(jnp.bfloat16),
                 preferred_element_type=jnp.float32) + p["b2"]
    h2 = jnp.maximum(h2, 0.0).astype(jnp.bfloat16)
    return jnp.dot(h2, p["w3"].astype(jnp.bfloat16),
                   preferred_element_type=jnp.float32) + p["b3"]


def reference_forward_f32(state, p):
    h1 = jnp.maximum(state @ p["w1"] + p["b1"], 0.0)
    h2 = jnp.maximum(h1 @ p["w2"] + p["b2"], 0.0)
    return h2 @ p["w3"] + p["b3"]


if __name__ == "__main__":
    # Small shapes consistent with DeepQNetwork(lr, input_dims=(8,), fc1_dims=32,
    # fc2_dims=32, n_actions=4) applied to a batch of 2 states.
    # TODO(synk): optimizer (Adam) and MSELoss are training-side and not part of forward.
    B, D_IN, FC1, FC2, N_ACT = 2, 8, 32, 32, 4

    key = jax.random.PRNGKey(0)
    k_state, k_params = jax.random.split(key)

    state = jax.random.normal(k_state, (B, D_IN), jnp.float32)
    params = init_params(k_params, D_IN, FC1, FC2, N_ACT)
    prepared, meta = prepare_params(params)

    actions = dqn_forward(state, prepared, meta)
    actions = jax.block_until_ready(actions)
    assert actions.shape == (B, N_ACT)

    # Check against a JAX reference with the identical precision policy.
    expected_mixed = reference_forward_mixed(state, params)
    assert jnp.allclose(actions, expected_mixed, atol=1e-2, rtol=1e-2)

    # Sanity check against the pure-f32 module semantics (bf16 rounding slack).
    expected_f32 = reference_forward_f32(state, params)
    assert jnp.allclose(actions, expected_f32, atol=5e-2, rtol=5e-2)

    # Exercise the multi-tile path (grid >= 2, batch padding, megacore split).
    k_big = jax.random.PRNGKey(1)
    state_big = jax.random.normal(k_big, (600, D_IN), jnp.float32)
    actions_big = jax.block_until_ready(dqn_forward(state_big, prepared, meta))
    assert actions_big.shape == (600, N_ACT)
    assert jnp.allclose(actions_big, reference_forward_f32(state_big, params),
                        atol=5e-2, rtol=5e-2)

    print("KERNEL_OK")
</pallas_src>

<mosaic_0001>
module attributes {stable_mosaic.version = 11 : i64} {
  func.func @dqn_kernel(%arg0: i32, %arg1: memref<8x8xf32, #tpu.memory_space<vmem>>, %arg2: memref<8x128xf32, #tpu.memory_space<vmem>>, %arg3: memref<1x128xf32, #tpu.memory_space<vmem>>, %arg4: memref<128x128xbf16, #tpu.memory_space<vmem>>, %arg5: memref<1x128xf32, #tpu.memory_space<vmem>>, %arg6: memref<128x128xbf16, #tpu.memory_space<vmem>>, %arg7: memref<1x128xf32, #tpu.memory_space<vmem>>, %arg8: memref<8x128xf32, #tpu.memory_space<vmem>>) attributes {dimension_semantics = [#tpu.dimension_semantics<parallel>], iteration_bounds = array<i64: 1>, scalar_prefetch = 0 : i64, scratch_operands = 0 : i64, tpu.core_type = #tpu.core_type<tc>, window_params = [{transform_indices = @transform_0, window_bounds = array<i64: 8, 8>}, {pipeline_mode = #tpu.pipeline_mode<synchronous>, transform_indices = @transform_1, window_bounds = array<i64: 8, 128>}, {pipeline_mode = #tpu.pipeline_mode<synchronous>, transform_indices = @transform_2, window_bounds = array<i64: 1, 128>}, {pipeline_mode = #tpu.pipeline_mode<synchronous>, transform_indices = @transform_3, window_bounds = array<i64: 128, 128>}, {pipeline_mode = #tpu.pipeline_mode<synchronous>, transform_indices = @transform_4, window_bounds = array<i64: 1, 128>}, {pipeline_mode = #tpu.pipeline_mode<synchronous>, transform_indices = @transform_5, window_bounds = array<i64: 128, 128>}, {pipeline_mode = #tpu.pipeline_mode<synchronous>, transform_indices = @transform_6, window_bounds = array<i64: 1, 128>}, {transform_indices = @transform_7, window_bounds = array<i64: 8, 128>}]} {
    %c0 = arith.constant 0 : index
    %c0_0 = arith.constant 0 : index
    %0 = vector.load %arg1[%c0, %c0_0] : memref<8x8xf32, #tpu.memory_space<vmem>>, vector<8x8xf32>
    %c0_1 = arith.constant 0 : index
    %c0_2 = arith.constant 0 : index
    %1 = vector.load %arg2[%c0_1, %c0_2] : memref<8x128xf32, #tpu.memory_space<vmem>>, vector<8x128xf32>
    %cst = arith.constant dense<0.000000e+00> : vector<8x128xf32>
    %2 = tpu.matmul %0, %1, %cst {dimension_numbers = #tpu.dot_dimension_numbers<[1], [0], [0], [1], [0, 0, 1, 1], [], []>} : vector<8x8xf32>, vector<8x128xf32>, vector<8x128xf32> -> vector<8x128xf32>
    %c0_3 = arith.constant 0 : index
    %c0_4 = arith.constant 0 : index
    %3 = vector.load %arg3[%c0_3, %c0_4] : memref<1x128xf32, #tpu.memory_space<vmem>>, vector<1x128xf32>
    %4 = vector.broadcast %3 : vector<1x128xf32> to vector<8x128xf32>
    %5 = arith.addf %2, %4 : vector<8x128xf32>
    %cst_5 = arith.constant 0.000000e+00 : f32
    %6 = vector.broadcast %cst_5 : f32 to vector<8x128xf32>
    %7 = arith.maximumf %5, %6 : vector<8x128xf32>
    %8 = arith.truncf %7 : vector<8x128xf32> to vector<8x128xbf16>
    %c0_6 = arith.constant 0 : index
    %c0_7 = arith.constant 0 : index
    %9 = vector.load %arg4[%c0_6, %c0_7] : memref<128x128xbf16, #tpu.memory_space<vmem>>, vector<128x128xbf16>
    %cst_8 = arith.constant dense<0.000000e+00> : vector<8x128xf32>
    %10 = tpu.matmul %8, %9, %cst_8 {dimension_numbers = #tpu.dot_dimension_numbers<[1], [0], [0], [1], [0, 0, 1, 1], [], []>} : vector<8x128xbf16>, vector<128x128xbf16>, vector<8x128xf32> -> vector<8x128xf32>
    %c0_9 = arith.constant 0 : index
    %c0_10 = arith.constant 0 : index
    %11 = vector.load %arg5[%c0_9, %c0_10] : memref<1x128xf32, #tpu.memory_space<vmem>>, vector<1x128xf32>
    %12 = vector.broadcast %11 : vector<1x128xf32> to vector<8x128xf32>
    %13 = arith.addf %10, %12 : vector<8x128xf32>
    %cst_11 = arith.constant 0.000000e+00 : f32
    %14 = vector.broadcast %cst_11 : f32 to vector<8x128xf32>
    %15 = arith.maximumf %13, %14 : vector<8x128xf32>
    %16 = arith.truncf %15 : vector<8x128xf32> to vector<8x128xbf16>
    %c0_12 = arith.constant 0 : index
    %c0_13 = arith.constant 0 : index
    %17 = vector.load %arg6[%c0_12, %c0_13] : memref<128x128xbf16, #tpu.memory_space<vmem>>, vector<128x128xbf16>
    %cst_14 = arith.constant dense<0.000000e+00> : vector<8x128xf32>
    %18 = tpu.matmul %16, %17, %cst_14 {dimension_numbers = #tpu.dot_dimension_numbers<[1], [0], [0], [1], [0, 0, 1, 1], [], []>} : vector<8x128xbf16>, vector<128x128xbf16>, vector<8x128xf32> -> vector<8x128xf32>
    %c0_15 = arith.constant 0 : index
    %c0_16 = arith.constant 0 : index
    %19 = vector.load %arg7[%c0_15, %c0_16] : memref<1x128xf32, #tpu.memory_space<vmem>>, vector<1x128xf32>
    %20 = vector.broadcast %19 : vector<1x128xf32> to vector<8x128xf32>
    %21 = arith.addf %18, %20 : vector<8x128xf32>
    %c0_17 = arith.constant 0 : index
    %c0_18 = arith.constant 0 : index
    %22 = vector.load %arg8[%c0_17, %c0_18] : memref<8x128xf32, #tpu.memory_space<vmem>>, vector<8x128xf32>
    tpu.vector_store %arg8[%c0_17, %c0_18], %21 {strides = array<i32>} : memref<8x128xf32, #tpu.memory_space<vmem>>, vector<8x128xf32>,
    return
  }
  func.func @transform_0(%arg0: i32) -> (i32, i32) {
    %c0_i32 = arith.constant 0 : i32
    %c0_i32_0 = arith.constant 0 : i32
    return %arg0, %c0_i32 : i32, i32
  }
  func.func @transform_1(%arg0: i32) -> (i32, i32) {
    %c0_i32 = arith.constant 0 : i32
    %c0_i32_0 = arith.constant 0 : i32
    %c0_i32_1 = arith.constant 0 : i32
    return %c0_i32, %c0_i32_0 : i32, i32
  }
  func.func @transform_2(%arg0: i32) -> (i32, i32) {
    %c0_i32 = arith.constant 0 : i32
    %c0_i32_0 = arith.constant 0 : i32
    %c0_i32_1 = arith.constant 0 : i32
    return %c0_i32, %c0_i32_0 : i32, i32
  }
  func.func @transform_3(%arg0: i32) -> (i32, i32) {
    %c0_i32 = arith.constant 0 : i32
    %c0_i32_0 = arith.constant 0 : i32
    %c0_i32_1 = arith.constant 0 : i32
    return %c0_i32, %c0_i32_0 : i32, i32
  }
  func.func @transform_4(%arg0: i32) -> (i32, i32) {
    %c0_i32 = arith.constant 0 : i32
    %c0_i32_0 = arith.constant 0 : i32
    %c0_i32_1 = arith.constant 0 : i32
    return %c0_i32, %c0_i32_0 : i32, i32
  }
  func.func @transform_5(%arg0: i32) -> (i32, i32) {
    %c0_i32 = arith.constant 0 : i32
    %c0_i32_0 = arith.constant 0 : i32
    %c0_i32_1 = arith.constant 0 : i32
    return %c0_i32, %c0_i32_0 : i32, i32
  }
  func.func @transform_6(%arg0: i32) -> (i32, i32) {
    %c0_i32 = arith.constant 0 : i32
    %c0_i32_0 = arith.constant 0 : i32
    %c0_i32_1 = arith.constant 0 : i32
    return %c0_i32, %c0_i32_0 : i32, i32
  }
  func.func @transform_7(%arg0: i32) -> (i32, i32) {
    %c0_i32 = arith.constant 0 : i32
    %c0_i32_0 = arith.constant 0 : i32
    return %arg0, %c0_i32 : i32, i32
  }
}

</mosaic_0001>

<bundles_post_ra>
// kernel: tpu_custom_call.1
= control target key start
LH: loop header
LB: loop body
LE: loop exit
PB: predicated region body
PF: predicated region fallthrough
CT: control target
= control target key end

     0   :  { %12 = vsyncpa [#allocation3], 0  ;;  %s592_s0 = inlined_call_operand.hbm [shape: f32[8,8], index: 0, kind: input, shape index: {}]   ;;  %s593_s1 = inlined_call_operand.hbm [shape: f32[8,128], index: 1, kind: input, shape index: {}]   ;;  %s594_s2 = inlined_call_operand.vmem [shape: f32[1,128], index: 2, kind: input, shape index: {}]   ;;  %s595_s3 = inlined_call_operand.hbm [shape: bf16[128,128], index: 3, kind: input, shape index: {}]   ;;  %s596_s4 = inlined_call_operand.vmem [shape: f32[1,128], index: 4, kind: input, shape index: {}]   ;;  %s597_s5 = inlined_call_operand.hbm [shape: bf16[128,128], index: 5, kind: input, shape index: {}]   ;;  %s598_s6 = inlined_call_operand.vmem [shape: f32[1,128], index: 6, kind: input, shape index: {}]   ;;  %s599_s7 = inlined_call_operand.hbm [shape: f32[8,128], index: 7, kind: output, shape index: {}]  }
   0x1   :  { %13 = vsyncpa [#allocation6], 0 }
   0x2   :  { %14 = vsyncpa [#allocation9], 0  ;;  %s32_s26 = sshll.u32 %s593_s1, 4  ;;  %s33_s26 = int_to_ptr.hbm [resolvable:$true] %s32_s26 }
   0x3   :  { %15 = vsyncpa [#allocation4], 0  ;;  %s521_s27 = smov [#allocation5]   ;;  %s21_s8 = sshll.u32 %s592_s0, 4  ;;  %s22_s8 = int_to_ptr.hbm [resolvable:$true] %s21_s8 }
   0x4   :  { %s34_s28 = sshll.u32 %s521_s27, 4  ;;  %s522_s9 = smov [#allocation2]   ;;  %s35_s28 = int_to_ptr.vmem [resolvable:$true] %s34_s28 }
   0x5   :  { %37 = dma.hbm_to_vmem [thread:$0]  %s33_s26, 128, %s35_s28, [#allocation6]  }
   0x6   :  { %s23_s10 = sshll.u32 %s522_s9, 4  ;;  %s44_s13 = sshll.u32 %s595_s3, 4  ;;  %s24_s10 = int_to_ptr.vmem [resolvable:$true] %s23_s10  ;;  %s45_s13 = int_to_ptr.hbm [resolvable:$true] %s44_s13 }
   0x7   :  { %26 = dma.hbm_to_vmem [thread:$0]  %s22_s8, 128, %s24_s10, [#allocation3]  }
   0x8   :  { %s523_s1 = smov [#allocation7]   ;;  %s59_s17 = sshll.u32 %s597_s5, 4  ;;  %s60_s17 = int_to_ptr.hbm [resolvable:$true] %s59_s17 }
   0x9   :  { %s46_s14 = sshll.u32 %s523_s1, 4  ;;  %s524_s18 = smov 64   ;;  %s47_s14 = int_to_ptr.vmem [resolvable:$true] %s46_s14 }
   0xa   :  { %s525_s0 = smov 4   ;;  %s526_s19 = smov [#allocation8]  }
   0xb   :  { %52 = dma.hbm_to_vmem [thread:$0]  %s45_s13, 1024, %s47_s14, [#allocation6], %s524_s18, %s524_s18, %s525_s0  }
   0xc   :  { %s61_s20 = sshll.u32 %s526_s19, 4  ;;  %s62_s20 = int_to_ptr.vmem [resolvable:$true] %s61_s20 }
   0xd   :  { %67 = dma.hbm_to_vmem [thread:$0]  %s60_s17, 1024, %s62_s20, [#allocation9], %s524_s18, %s524_s18, %s525_s0  }
   0xe   :  { %513 = dma.done.wait [#allocation3], 128  }
   0xf   :  { %514 = vsyncadd [#allocation3], 4294967168 }
  0x10   :  { %515 = dma.done.wait [#allocation6], 1152  }
  0x11   :  { %516 = vsyncadd [#allocation6], 4294966144 }
  0x12   :  { %517 = dma.done.wait [#allocation9], 1024  }
  0x13   :  { %518 = vsyncadd [#allocation9], 4294966272  ;;  %vm92_vm0 = vcmask 64512   ;;  %v87_v0 = vld [vmem:[#allocation5] sm:$0xff]  ;;  %v86_v1 = vld [vmem:[#allocation2] sm:$0xff]  ;;  %s527_s24 = smov [#allocation10]  }
  0x14   :  { %v374_v2 = vld [vmem:[#allocation7 + $0x38] sm:$0xff]  ;;  %111 = vmatpush.msra.mxu0 %v87_v0  ;;  %v373_v3 = vld [vmem:[#allocation7 + $0x30] sm:$0xff]  ;;  %v372_v4 = vld [vmem:[#allocation7 + $0x28] sm:$0xff]  ;;  %s288_s25 = sshll.u32 %s527_s24, 4  ;;  %s290_s28 = sshll.u32 %s599_s7, 4  ;;  %s289_s25 = int_to_ptr.vmem [resolvable:$true] %s288_s25  ;;  %s291_s28 = int_to_ptr.hbm [resolvable:$true] %s290_s28 }
  0x15   :  { %302 = vmatmul.msk.f32.vlgmr.msra.gmra.mxu0 %vm92_vm0, %v86_v1  ;;  %186 = vmatpush.bf16.msra.mxu1 %v374_v2  ;;  %v371_v5 = vld [vmem:[#allocation7 + $0x20] sm:$0xff]  ;;  %v370_v6 = vld [vmem:[#allocation7 + $0x18] sm:$0xff]  ;;  %v369_v7 = vld [vmem:[#allocation7 + $0x10] sm:$0xff] }
  0x16   :  { %v368_v8 = vld [vmem:[#allocation7 + $0x8] sm:$0xff]  ;;  %v367_v9 = vld [vmem:[#allocation7] sm:$0xff]  ;;  %v382_v10 = vld [vmem:[#allocation8 + $0x38] sm:$0xff] }
  0x17   :  { %269 = vmatpush.bf16.msra.mxu2 %v382_v10  ;;  %v381_v11 = vld [vmem:[#allocation8 + $0x30] sm:$0xff]  ;;  %v380_v12 = vld [vmem:[#allocation8 + $0x28] sm:$0xff]  ;;  %v379_v13 = vld [vmem:[#allocation8 + $0x20] sm:$0xff] }
  0x18   :  { %v378_v14 = vld [vmem:[#allocation8 + $0x18] sm:$0xff]  ;;  %v377_v15 = vld [vmem:[#allocation8 + $0x10] sm:$0xff]  ;;  %v376_v21 = vld [vmem:[#allocation8 + $0x8] sm:$0xff] }
  0x19   :  { %187 = vmatpush.bf16.msra.mxu1 %v373_v3  ;;  %v390_v16 = vld [vmem:[%s594_s2] ss:$0 sm:$0xff]  ;;  %v375_v22 = vld [vmem:[#allocation8] sm:$0xff] }
  0x1a   :  { %v391_v23 = vld [vmem:[%s596_s4] ss:$0 sm:$0xff] }
  0x1b   :  { %270 = vmatpush.bf16.msra.mxu2 %v381_v11  ;;  %v392_v29 = vld [vmem:[%s598_s6] ss:$0 sm:$0xff] }
  0x1d   :  { %188 = vmatpush.bf16.msra.mxu1 %v372_v4 }
  0x1f   :  { %271 = vmatpush.bf16.msra.mxu2 %v380_v12 }
  0x21   :  { %189 = vmatpush.bf16.msra.mxu1 %v371_v5 }
  0x23   :  { %272 = vmatpush.bf16.msra.mxu2 %v379_v13 }
  0x25   :  { %190 = vmatpush.bf16.msra.mxu1 %v370_v6 }
  0x27   :  { %273 = vmatpush.bf16.msra.mxu2 %v378_v14 }
  0x29   :  { %191 = vmatpush.bf16.msra.mxu1 %v369_v7 }
  0x2b   :  { %274 = vmatpush.bf16.msra.mxu2 %v377_v15 }
  0x2d   :  { %192 = vmatpush.bf16.msra.mxu1 %v368_v8 }
  0x2f   :  { %275 = vmatpush.bf16.msra.mxu2 %v376_v21 }
  0x31   :  { %193 = vmatpush.bf16.msra.mxu1 %v367_v9 }
  0x33   :  { %276 = vmatpush.bf16.msra.mxu2 %v375_v22 }
  0x92   :  { %v113_v17 = vpop.f32.mrf.mxu0 }
  0x93   :  { %v114_v18 = vadd.f32 %v390_v16, %v113_v17 }
  0x95   :  { %v116_v19 = vmax.f32 %v114_v18, 0.0 }
  0x97   :  { %v117_v20 = vpack.c.bf16 %v116_v19, %v116_v19 }
  0x99   :  { %194 = vmatmul.bf16.vlgmr.msra.gmra.mxu1 %v117_v20 }
 0x116   :  { %v195_v24 = vpop.f32.mrf.mxu1 }
 0x117   :  { %v196_v25 = vadd.f32 %v391_v23, %v195_v24 }
 0x119   :  { %v199_v26 = vmax.f32 %v196_v25, 0.0 }
 0x11b   :  { %v200_v27 = vpack.c.bf16 %v199_v26, %v199_v26 }
 0x11d   :  { %277 = vmatmul.bf16.vlgmr.msra.gmra.mxu2 %v200_v27 }
 0x11e   :  { %v197_v28 = vpop.f32.mrf.mxu1 }
 0x1a0   :  { %v278_v30 = vpop.f32.mrf.mxu2 }
 0x1a1   :  { %v279_v31 = vadd.f32 %v392_v29, %v278_v30 }
 0x1a3   :  { %282 = vst [vmem:[#allocation10] sm:$0xff] %v279_v31 }
 0x1a4   :  { %293 = dma.vmem_to_hbm [thread:$0]  %s289_s25, 128, %s291_s28, [#allocation4]  }
 0x1a8   :  { %v280_v32 = vpop.f32.mrf.mxu2 }
 0x1a9   :  { %519 = dma.done.wait [#allocation4], 128  }
 0x1aa   :  { %520 = vsyncadd [#allocation4], 4294967168 }
 0x1ab   :  { %298 = vsyncpa [#allocation3], 1 }
 0x1ac   :  { %299 = vsyncpa [#allocation6], 1 }
 0x1ad   :  { %300 = vsyncpa [#allocation9], 1 }
 0x1ae   :  { %301 = vsyncpa [#allocation4], 1 }

</bundles_post_ra>
